<compile_context>
chip_gen: v6e
topology: v6e:2x2x1
jax: 0.10.0
libtpu: 0.0.40
codegen_flags: <defaults>
</compile_context>

<pallas_src>
from functools import partial

import jax
import jax.numpy as jnp
from jax.experimental import pallas as pl
from jax.experimental.pallas import tpu as pltpu

ALPHA = 0.5


def _round_up(x, m):
    return (x + m - 1) // m * m


def _neumf_kernel(u_mlp_ref, i_mlp_ref, u_gmf_ref, i_gmf_ref,
                  w1a_ref, w1b_ref, b1_ref,
                  w2_ref, b2_ref,
                  w3a_ref, w3b_ref, b3_ref,
                  out_ref):
    """Batch-major layout: activations are (TILE_B, feat); batch on MXU M / sublanes."""
    # MLP layer 1: concat(u, i) @ W1.T  ==  u @ W1a.T + i @ W1b.T  (exact split).
    h1 = (jnp.dot(u_mlp_ref[...], w1a_ref[...], preferred_element_type=jnp.float32)
          + jnp.dot(i_mlp_ref[...], w1b_ref[...], preferred_element_type=jnp.float32)
          + b1_ref[...])                                    # (TILE_B, 2F) f32
    h1 = jnp.maximum(h1, 0.0)
    # TODO(synk): nn.Dropout(0.75)/(0.5) are identity in eval mode; training-mode
    # dropout would need pltpu.prng_seed / prng_random_bits masks.
    h2 = jnp.dot(h1.astype(jnp.bfloat16), w2_ref[...],
                 preferred_element_type=jnp.float32) + b2_ref[...]
    h2 = jnp.maximum(h2, 0.0)                               # (TILE_B, F) f32

    # GMF branch: upcast to f32 before the VPU multiply (v5e has no bf16 VPU).
    mf = u_gmf_ref[...].astype(jnp.float32) * i_gmf_ref[...].astype(jnp.float32)

    # Final N=1 linear as VPU multiply + lane (XLU) reduce; alpha / (1-alpha)
    # are pre-folded into w3a / w3b in the wrapper.
    logits = (jnp.sum(h2 * w3a_ref[...], axis=-1, keepdims=True)
              + jnp.sum(mf * w3b_ref[...], axis=-1, keepdims=True)
              + b3_ref[0, 0])                               # (TILE_B, 1)
    out_ref[...] = jax.nn.sigmoid(logits)


@partial(jax.jit, static_argnames=("n_factors", "tile_b"))
def neumf_forward(user, item, params, n_factors, tile_b=2048):
    F = n_factors
    B = user.shape[0]

    # Batch tile: always a multiple of 128 (lane/MXU friendliness), capped at
    # the padded batch.  Keep >=2 grid steps when the batch allows it so the
    # "parallel" axis can shard across both v7x TensorCores.
    tile_b = _round_up(max(int(tile_b), 128), 128)
    TILE_B = max(128, min(tile_b, _round_up(B, 128)))
    if _round_up(B, TILE_B) // TILE_B == 1 and TILE_B > 128:
        TILE_B = max(128, _round_up(TILE_B // 2, 128))
    B_pad = _round_up(B, TILE_B)
    if B_pad != B:
        pad = B_pad - B
        user = jnp.concatenate([user, jnp.zeros((pad,), user.dtype)])
        item = jnp.concatenate([item, jnp.zeros((pad,), item.dtype)])

    # Embedding lookups (gather) -> bf16 activations, batch-major (no transpose).
    # Gather + convert fuse into one XLA pass under jit; halves activation bytes
    # the kernel has to stream from HBM.
    # TODO(synk): gather stays in XLA — embedding rows are only 40–80 elems, so
    # a per-row in-kernel DMA gather would be slower than XLA's fused gather.
    u_mlp = params["user_emb_mlp"][user].astype(jnp.bfloat16)   # (B_pad, 2F)
    i_mlp = params["item_emb_mlp"][item].astype(jnp.bfloat16)   # (B_pad, 2F)
    u_gmf = params["user_emb_gmf"][user].astype(jnp.bfloat16)   # (B_pad, F)
    i_gmf = params["item_emb_gmf"][item].astype(jnp.bfloat16)   # (B_pad, F)

    # PyTorch Linear weights are (out, in); batch-major compute needs X @ W.T,
    # so pre-transpose (tiny, done once per call) and cast matmul weights to bf16.
    w1 = params["mlp_w1"]                                        # (2F, 4F)
    w1a_t = w1[:, :2 * F].T.astype(jnp.bfloat16)                 # (2F, 2F)
    w1b_t = w1[:, 2 * F:].T.astype(jnp.bfloat16)                 # (2F, 2F)
    b1 = params["mlp_b1"][None, :]                               # (1, 2F) f32
    w2_t = params["mlp_w2"].T.astype(jnp.bfloat16)               # (2F, F)
    b2 = params["mlp_b2"][None, :]                               # (1, F) f32
    w3 = params["nmf_w"]                                         # (1, 2F)
    w3a = (ALPHA * w3[:, :F]).astype(jnp.float32)                # (1, F), alpha folded
    w3b = ((1.0 - ALPHA) * w3[:, F:]).astype(jnp.float32)        # (1, F)
    b3 = params["nmf_b"].reshape(1, 1).astype(jnp.float32)       # (1, 1) -> SMEM

    grid = (B_pad // TILE_B,)
    act_spec_2f = pl.BlockSpec((TILE_B, 2 * F), lambda i: (i, 0))
    act_spec_f = pl.BlockSpec((TILE_B, F), lambda i: (i, 0))

    def const_spec(shape):
        # Same block every grid step -> DMA'd once, kept resident in VMEM.
        return pl.BlockSpec(shape, lambda i: (0, 0))

    out = pl.pallas_call(
        _neumf_kernel,
        out_shape=jax.ShapeDtypeStruct((B_pad, 1), jnp.float32),
        grid=grid,
        in_specs=[
            act_spec_2f, act_spec_2f, act_spec_f, act_spec_f,
            const_spec((2 * F, 2 * F)), const_spec((2 * F, 2 * F)),
            const_spec((1, 2 * F)),
            const_spec((2 * F, F)), const_spec((1, F)),
            const_spec((1, F)), const_spec((1, F)),
            pl.BlockSpec(memory_space=pltpu.MemorySpace.SMEM),
        ],
        out_specs=pl.BlockSpec((TILE_B, 1), lambda i: (i, 0)),
        compiler_params=pltpu.CompilerParams(
            dimension_semantics=("parallel",),
            vmem_limit_bytes=32 * 1024 * 1024,
        ),
    )(u_mlp, i_mlp, u_gmf, i_gmf,
      w1a_t, w1b_t, b1, w2_t, b2, w3a, w3b, b3)
    return out[:B, 0]                                            # (B,), matches torch.squeeze


def init_params(key, n_users, n_items, n_factors):
    F = n_factors
    ks = jax.random.split(key, 10)

    def lin_init(k, out_dim, in_dim):
        bound = 1.0 / jnp.sqrt(in_dim)
        kw, kb = jax.random.split(k)
        w = jax.random.uniform(kw, (out_dim, in_dim), jnp.float32, -bound, bound)
        b = jax.random.uniform(kb, (out_dim,), jnp.float32, -bound, bound)
        return w, b

    mlp_w1, mlp_b1 = lin_init(ks[4], 2 * F, 4 * F)
    mlp_w2, mlp_b2 = lin_init(ks[5], F, 2 * F)
    nmf_w, nmf_b = lin_init(ks[6], 1, 2 * F)
    return {
        "user_emb_mlp": jax.random.normal(ks[0], (n_users, 2 * F), jnp.float32),
        "item_emb_mlp": jax.random.normal(ks[1], (n_items, 2 * F), jnp.float32),
        "user_emb_gmf": jax.random.normal(ks[2], (n_users, F), jnp.float32),
        "item_emb_gmf": jax.random.normal(ks[3], (n_items, F), jnp.float32),
        "mlp_w1": mlp_w1, "mlp_b1": mlp_b1,
        "mlp_w2": mlp_w2, "mlp_b2": mlp_b2,
        "nmf_w": nmf_w, "nmf_b": nmf_b,
    }


def _ref_forward(user, item, p, n_factors):
    """Pure-JAX f32 reference (eval-mode NeuMF)."""
    F = n_factors
    mlp_x = jnp.concatenate([p["user_emb_mlp"][user], p["item_emb_mlp"][item]], axis=1)
    h1 = jnp.maximum(mlp_x @ p["mlp_w1"].T + p["mlp_b1"], 0.0)
    h2 = jnp.maximum(h1 @ p["mlp_w2"].T + p["mlp_b2"], 0.0)
    mf = p["user_emb_gmf"][user] * p["item_emb_gmf"][item]
    x = jnp.concatenate([ALPHA * h2, (1.0 - ALPHA) * mf], axis=1)
    return jax.nn.sigmoid(x @ p["nmf_w"].T + p["nmf_b"]).squeeze()


if __name__ == "__main__":
    n_users, n_items, n_factors = 50, 60, 20
    key = jax.random.PRNGKey(0)
    kp, ku, ki = jax.random.split(key, 3)
    params = init_params(kp, n_users, n_items, n_factors)

    # Small batch (single tile, padded to 128).
    batch = 8
    user = jax.random.randint(ku, (batch,), 0, n_users, dtype=jnp.int32)
    item = jax.random.randint(ki, (batch,), 0, n_items, dtype=jnp.int32)
    out = neumf_forward(user, item, params, n_factors)
    jax.block_until_ready(out)
    expected = _ref_forward(user, item, params, n_factors)
    assert out.shape == (batch,)
    # bf16 activations vs f32 reference: loosened tolerance.
    assert jnp.allclose(out, expected, atol=1e-2, rtol=1e-2)

    # Slightly larger, non-multiple batch: exercises padding + a multi-step grid.
    batch2 = 200
    ku2, ki2 = jax.random.split(jax.random.PRNGKey(1), 2)
    user2 = jax.random.randint(ku2, (batch2,), 0, n_users, dtype=jnp.int32)
    item2 = jax.random.randint(ki2, (batch2,), 0, n_items, dtype=jnp.int32)
    out2 = neumf_forward(user2, item2, params, n_factors)
    jax.block_until_ready(out2)
    expected2 = _ref_forward(user2, item2, params, n_factors)
    assert out2.shape == (batch2,)
    assert jnp.allclose(out2, expected2, atol=1e-2, rtol=1e-2)

    print("KERNEL_OK")
</pallas_src>

<mosaic_0001>
module attributes {stable_mosaic.version = 11 : i64} {
  func.func @_neumf_kernel(%arg0: i32, %arg1: memref<128x40xbf16, #tpu.memory_space<vmem>>, %arg2: memref<128x40xbf16, #tpu.memory_space<vmem>>, %arg3: memref<128x20xbf16, #tpu.memory_space<vmem>>, %arg4: memref<128x20xbf16, #tpu.memory_space<vmem>>, %arg5: memref<40x40xbf16, #tpu.memory_space<vmem>>, %arg6: memref<40x40xbf16, #tpu.memory_space<vmem>>, %arg7: memref<1x40xf32, #tpu.memory_space<vmem>>, %arg8: memref<40x20xbf16, #tpu.memory_space<vmem>>, %arg9: memref<1x20xf32, #tpu.memory_space<vmem>>, %arg10: memref<1x20xf32, #tpu.memory_space<vmem>>, %arg11: memref<1x20xf32, #tpu.memory_space<vmem>>, %arg12: memref<1x1xf32, #tpu.memory_space<smem>>, %arg13: memref<128x1xf32, #tpu.memory_space<vmem>>) attributes {dimension_semantics = [#tpu.dimension_semantics<parallel>], iteration_bounds = array<i64: 1>, scalar_prefetch = 0 : i64, scratch_operands = 0 : i64, tpu.core_type = #tpu.core_type<tc>, window_params = [{transform_indices = @transform_0, window_bounds = array<i64: 128, 40>}, {transform_indices = @transform_1, window_bounds = array<i64: 128, 40>}, {transform_indices = @transform_2, window_bounds = array<i64: 128, 20>}, {transform_indices = @transform_3, window_bounds = array<i64: 128, 20>}, {pipeline_mode = #tpu.pipeline_mode<synchronous>, transform_indices = @transform_4, window_bounds = array<i64: 40, 40>}, {pipeline_mode = #tpu.pipeline_mode<synchronous>, transform_indices = @transform_5, window_bounds = array<i64: 40, 40>}, {pipeline_mode = #tpu.pipeline_mode<synchronous>, transform_indices = @transform_6, window_bounds = array<i64: 1, 40>}, {pipeline_mode = #tpu.pipeline_mode<synchronous>, transform_indices = @transform_7, window_bounds = array<i64: 40, 20>}, {pipeline_mode = #tpu.pipeline_mode<synchronous>, transform_indices = @transform_8, window_bounds = array<i64: 1, 20>}, {pipeline_mode = #tpu.pipeline_mode<synchronous>, transform_indices = @transform_9, window_bounds = array<i64: 1, 20>}, {pipeline_mode = #tpu.pipeline_mode<synchronous>, transform_indices = @transform_10, window_bounds = array<i64: 1, 20>}, {transform_indices = @transform_11, window_bounds = array<i64: 1, 1>}, {transform_indices = @transform_12, window_bounds = array<i64: 128, 1>}]} {
    %c0 = arith.constant 0 : index
    %c0_0 = arith.constant 0 : index
    %0 = vector.load %arg1[%c0, %c0_0] : memref<128x40xbf16, #tpu.memory_space<vmem>>, vector<128x40xbf16>
    %c0_1 = arith.constant 0 : index
    %c0_2 = arith.constant 0 : index
    %1 = vector.load %arg5[%c0_1, %c0_2] : memref<40x40xbf16, #tpu.memory_space<vmem>>, vector<40x40xbf16>
    %cst = arith.constant dense<0.000000e+00> : vector<128x40xf32>
    %2 = tpu.matmul %0, %1, %cst {dimension_numbers = #tpu.dot_dimension_numbers<[1], [0], [0], [1], [0, 0, 1, 1], [], []>} : vector<128x40xbf16>, vector<40x40xbf16>, vector<128x40xf32> -> vector<128x40xf32>
    %c0_3 = arith.constant 0 : index
    %c0_4 = arith.constant 0 : index
    %3 = vector.load %arg2[%c0_3, %c0_4] : memref<128x40xbf16, #tpu.memory_space<vmem>>, vector<128x40xbf16>
    %c0_5 = arith.constant 0 : index
    %c0_6 = arith.constant 0 : index
    %4 = vector.load %arg6[%c0_5, %c0_6] : memref<40x40xbf16, #tpu.memory_space<vmem>>, vector<40x40xbf16>
    %cst_7 = arith.constant dense<0.000000e+00> : vector<128x40xf32>
    %5 = tpu.matmul %3, %4, %cst_7 {dimension_numbers = #tpu.dot_dimension_numbers<[1], [0], [0], [1], [0, 0, 1, 1], [], []>} : vector<128x40xbf16>, vector<40x40xbf16>, vector<128x40xf32> -> vector<128x40xf32>
    %6 = arith.addf %2, %5 : vector<128x40xf32>
    %c0_8 = arith.constant 0 : index
    %c0_9 = arith.constant 0 : index
    %7 = vector.load %arg7[%c0_8, %c0_9] : memref<1x40xf32, #tpu.memory_space<vmem>>, vector<1x40xf32>
    %8 = vector.broadcast %7 : vector<1x40xf32> to vector<128x40xf32>
    %9 = arith.addf %6, %8 : vector<128x40xf32>
    %cst_10 = arith.constant 0.000000e+00 : f32
    %10 = vector.broadcast %cst_10 : f32 to vector<128x40xf32>
    %11 = arith.maximumf %9, %10 : vector<128x40xf32>
    %12 = arith.truncf %11 : vector<128x40xf32> to vector<128x40xbf16>
    %c0_11 = arith.constant 0 : index
    %c0_12 = arith.constant 0 : index
    %13 = vector.load %arg8[%c0_11, %c0_12] : memref<40x20xbf16, #tpu.memory_space<vmem>>, vector<40x20xbf16>
    %cst_13 = arith.constant dense<0.000000e+00> : vector<128x20xf32>
    %14 = tpu.matmul %12, %13, %cst_13 {dimension_numbers = #tpu.dot_dimension_numbers<[1], [0], [0], [1], [0, 0, 1, 1], [], []>} : vector<128x40xbf16>, vector<40x20xbf16>, vector<128x20xf32> -> vector<128x20xf32>
    %c0_14 = arith.constant 0 : index
    %c0_15 = arith.constant 0 : index
    %15 = vector.load %arg9[%c0_14, %c0_15] : memref<1x20xf32, #tpu.memory_space<vmem>>, vector<1x20xf32>
    %16 = vector.broadcast %15 : vector<1x20xf32> to vector<128x20xf32>
    %17 = arith.addf %14, %16 : vector<128x20xf32>
    %cst_16 = arith.constant 0.000000e+00 : f32
    %18 = vector.broadcast %cst_16 : f32 to vector<128x20xf32>
    %19 = arith.maximumf %17, %18 : vector<128x20xf32>
    %c0_17 = arith.constant 0 : index
    %c0_18 = arith.constant 0 : index
    %20 = vector.load %arg3[%c0_17, %c0_18] : memref<128x20xbf16, #tpu.memory_space<vmem>>, vector<128x20xbf16>
    %21 = arith.extf %20 : vector<128x20xbf16> to vector<128x20xf32>
    %c0_19 = arith.constant 0 : index
    %c0_20 = arith.constant 0 : index
    %22 = vector.load %arg4[%c0_19, %c0_20] : memref<128x20xbf16, #tpu.memory_space<vmem>>, vector<128x20xbf16>
    %23 = arith.extf %22 : vector<128x20xbf16> to vector<128x20xf32>
    %24 = arith.mulf %21, %23 : vector<128x20xf32>
    %c0_21 = arith.constant 0 : index
    %c0_22 = arith.constant 0 : index
    %25 = vector.load %arg10[%c0_21, %c0_22] : memref<1x20xf32, #tpu.memory_space<vmem>>, vector<1x20xf32>
    %26 = vector.broadcast %25 : vector<1x20xf32> to vector<128x20xf32>
    %27 = arith.mulf %19, %26 : vector<128x20xf32>
    %cst_23 = arith.constant dense<0.000000e+00> : vector<128xf32>
    %28 = vector.multi_reduction <add>, %27, %cst_23 [1] : vector<128x20xf32> to vector<128xf32>
    %29 = vector.shape_cast %28 : vector<128xf32> to vector<128x1xf32>
    %c0_24 = arith.constant 0 : index
    %c0_25 = arith.constant 0 : index
    %30 = vector.load %arg11[%c0_24, %c0_25] : memref<1x20xf32, #tpu.memory_space<vmem>>, vector<1x20xf32>
    %31 = vector.broadcast %30 : vector<1x20xf32> to vector<128x20xf32>
    %32 = arith.mulf %24, %31 : vector<128x20xf32>
    %cst_26 = arith.constant dense<0.000000e+00> : vector<128xf32>
    %33 = vector.multi_reduction <add>, %32, %cst_26 [1] : vector<128x20xf32> to vector<128xf32>
    %34 = vector.shape_cast %33 : vector<128xf32> to vector<128x1xf32>
    %35 = arith.addf %29, %34 : vector<128x1xf32>
    %c0_27 = arith.constant 0 : index
    %c0_28 = arith.constant 0 : index
    %36 = memref.load %arg12[%c0_27, %c0_28] : memref<1x1xf32, #tpu.memory_space<smem>>
    %37 = vector.broadcast %36 : f32 to vector<128x1xf32>
    %38 = arith.addf %35, %37 : vector<128x1xf32>
    %39 = arith.negf %38 : vector<128x1xf32>
    %40 = math.exp %39 : vector<128x1xf32>
    %cst_29 = arith.constant 1.000000e+00 : f32
    %41 = vector.broadcast %cst_29 : f32 to vector<128x1xf32>
    %42 = arith.addf %41, %40 : vector<128x1xf32>
    %43 = arith.divf %41, %42 : vector<128x1xf32>
    %c0_30 = arith.constant 0 : index
    %c0_31 = arith.constant 0 : index
    %44 = vector.load %arg13[%c0_30, %c0_31] : memref<128x1xf32, #tpu.memory_space<vmem>>, vector<128x1xf32>
    tpu.vector_store %arg13[%c0_30, %c0_31], %43 {strides = array<i32>} : memref<128x1xf32, #tpu.memory_space<vmem>>, vector<128x1xf32>,
    return
  }
  func.func @transform_0(%arg0: i32) -> (i32, i32) {
    %c0_i32 = arith.constant 0 : i32
    %c0_i32_0 = arith.constant 0 : i32
    return %arg0, %c0_i32 : i32, i32
  }
  func.func @transform_1(%arg0: i32) -> (i32, i32) {
    %c0_i32 = arith.constant 0 : i32
    %c0_i32_0 = arith.constant 0 : i32
    return %arg0, %c0_i32 : i32, i32
  }
  func.func @transform_2(%arg0: i32) -> (i32, i32) {
    %c0_i32 = arith.constant 0 : i32
    %c0_i32_0 = arith.constant 0 : i32
    return %arg0, %c0_i32 : i32, i32
  }
  func.func @transform_3(%arg0: i32) -> (i32, i32) {
    %c0_i32 = arith.constant 0 : i32
    %c0_i32_0 = arith.constant 0 : i32
    return %arg0, %c0_i32 : i32, i32
  }
  func.func @transform_4(%arg0: i32) -> (i32, i32) {
    %c0_i32 = arith.constant 0 : i32
    %c0_i32_0 = arith.constant 0 : i32
    %c0_i32_1 = arith.constant 0 : i32
    return %c0_i32, %c0_i32_0 : i32, i32
  }
  func.func @transform_5(%arg0: i32) -> (i32, i32) {
    %c0_i32 = arith.constant 0 : i32
    %c0_i32_0 = arith.constant 0 : i32
    %c0_i32_1 = arith.constant 0 : i32
    return %c0_i32, %c0_i32_0 : i32, i32
  }
  func.func @transform_6(%arg0: i32) -> (i32, i32) {
    %c0_i32 = arith.constant 0 : i32
    %c0_i32_0 = arith.constant 0 : i32
    %c0_i32_1 = arith.constant 0 : i32
    return %c0_i32, %c0_i32_0 : i32, i32
  }
  func.func @transform_7(%arg0: i32) -> (i32, i32) {
    %c0_i32 = arith.constant 0 : i32
    %c0_i32_0 = arith.constant 0 : i32
    %c0_i32_1 = arith.constant 0 : i32
    return %c0_i32, %c0_i32_0 : i32, i32
  }
  func.func @transform_8(%arg0: i32) -> (i32, i32) {
    %c0_i32 = arith.constant 0 : i32
    %c0_i32_0 = arith.constant 0 : i32
    %c0_i32_1 = arith.constant 0 : i32
    return %c0_i32, %c0_i32_0 : i32, i32
  }
  func.func @transform_9(%arg0: i32) -> (i32, i32) {
    %c0_i32 = arith.constant 0 : i32
    %c0_i32_0 = arith.constant 0 : i32
    %c0_i32_1 = arith.constant 0 : i32
    return %c0_i32, %c0_i32_0 : i32, i32
  }
  func.func @transform_10(%arg0: i32) -> (i32, i32) {
    %c0_i32 = arith.constant 0 : i32
    %c0_i32_0 = arith.constant 0 : i32
    %c0_i32_1 = arith.constant 0 : i32
    return %c0_i32, %c0_i32_0 : i32, i32
  }
  func.func @transform_11(%arg0: i32) -> (i32, i32) {
    %c0_i32 = arith.constant 0 : i32
    %c0_i32_0 = arith.constant 0 : i32
    %c0_i32_1 = arith.constant 0 : i32
    return %c0_i32, %c0_i32_0 : i32, i32
  }
  func.func @transform_12(%arg0: i32) -> (i32, i32) {
    %c0_i32 = arith.constant 0 : i32
    %c0_i32_0 = arith.constant 0 : i32
    return %arg0, %c0_i32 : i32, i32
  }
}

</mosaic_0001>

<bundles_post_ra>
// kernel: neumf_forward.1
= control target key start
LH: loop header
LB: loop body
LE: loop exit
PB: predicated region body
PF: predicated region fallthrough
CT: control target
= control target key end

     0   :  { %vm165_vm0 = vcmask 1043456   ;;  %vm140_vm1 = vcmask 326656   ;;  %vm762_vm2 = vcmask 162816   ;;  %vm1012_vm3 = vcmask 7168   ;;  %s1827_s5 = inlined_call_operand.vmem [shape: bf16[40,40], index: 5, kind: input, shape index: {}]   ;;  %s1828_s1 = inlined_call_operand.vmem [shape: bf16[128,40], index: 1, kind: input, shape index: {}]   ;;  %s1829_s4 = inlined_call_operand.vmem [shape: bf16[40,40], index: 4, kind: input, shape index: {}]   ;;  %s1830_s0 = inlined_call_operand.vmem [shape: bf16[128,40], index: 0, kind: input, shape index: {}]   ;;  %s1831_s7 = inlined_call_operand.vmem [shape: bf16[40,20], index: 7, kind: input, shape index: {}]   ;;  %s1832_s2 = inlined_call_operand.vmem [shape: bf16[128,20], index: 2, kind: input, shape index: {}]   ;;  %s1833_s3 = inlined_call_operand.vmem [shape: bf16[128,20], index: 3, kind: input, shape index: {}]   ;;  %s1834_s10 = inlined_call_operand.vmem [shape: f32[1,20], index: 10, kind: input, shape index: {}]   ;;  %s1835_s6 = inlined_call_operand.vmem [shape: f32[1,40], index: 6, kind: input, shape index: {}]   ;;  %s1836_s8 = inlined_call_operand.vmem [shape: f32[1,20], index: 8, kind: input, shape index: {}]   ;;  %s1837_s9 = inlined_call_operand.vmem [shape: f32[1,20], index: 9, kind: input, shape index: {}]   ;;  %s1838_s11 = inlined_call_operand.<no memory space> [shape: f32[1,1], index: 11, kind: input, shape index: {}]   ;;  %s1839_s12 = inlined_call_operand.vmem [shape: f32[128,1], index: 12, kind: output, shape index: {}]  }
   0x1   :  { %v1289_v0 = vld [vmem:[%s1827_s5 + $0x10] ss:$0 sps:$4 sm:$0xff]   ;;  %v1290_v1 = vld [vmem:[%s1827_s5 + $0x8] sm:$0xff]   ;;  %v1292_v3 = vld [vmem:[%s1828_s1 + $0x20] sm:$0xff]  }
   0x2   :  { %1286 = vmatprep.subr.msk.bf16.mxu1 %vm165_vm0, %v1289_v0  ;;  %v167_v2 = vsel %vm165_vm0, %v1289_v0, 0  ;;  %1285 = vmatprep.subr.msk.bf16.mxu0 %vm165_vm0, %v1289_v0  ;;  %v1291_v4 = vld [vmem:[%s1827_s5] sm:$0xff]   ;;  %v1293_v5 = vld [vmem:[%s1828_s1 + $0x28] sm:$0xff]   ;;  %v1294_v6 = vld [vmem:[%s1829_s4 + $0x10] ss:$0 sps:$4 sm:$0xff]  }
   0x3   :  { %1282 = vmatpush3.bf16.msra.mxu1 %v167_v2  ;;  %1214 = vmatpush3.bf16.msra.mxu0 %v167_v2  ;;  %v1298_v7 = vld [vmem:[%s1828_s1] sm:$0xff]   ;;  %v1299_v8 = vld [vmem:[%s1828_s1 + $0x8] sm:$0xff]   ;;  %v1296_v9 = vld [vmem:[%s1828_s1 + $0x30] sm:$0xff]   ;;  %v346_v10 = vsel %vm165_vm0, %v1294_v6, 0 }
   0x4   :  { %1280 = vmatprep.subr.bf16.mxu1 %v1290_v1  ;;  %1215 = vmatprep.subr.bf16.mxu0 %v1290_v1  ;;  %v1295_v11 = vld [vmem:[%s1829_s4 + $0x8] sm:$0xff]   ;;  %v1303_v12 = vld [vmem:[%s1828_s1 + $0x10] sm:$0xff]   ;;  %v1300_v13 = vld [vmem:[%s1829_s4] sm:$0xff]  }
   0x5   :  { %1227 = vmatprep.mubr.msk.bf16.mxu1 %vm140_vm1, %v1292_v3  ;;  %1219 = vmatprep.mubr.msk.bf16.mxu0 %vm140_vm1, %v1298_v7  ;;  %v1297_v14 = vld [vmem:[%s1828_s1 + $0x38] sm:$0xff]   ;;  %v1301_v16 = vld [vmem:[%s1830_s0] sm:$0xff]   ;;  %v1302_v17 = vld [vmem:[%s1830_s0 + $0x8] sm:$0xff]  }
   0x6   :  { %v1304_v15 = vld [vmem:[%s1828_s1 + $0x18] sm:$0xff]   ;;  %v1305_v18 = vld [vmem:[%s1830_s0 + $0x10] sm:$0xff]   ;;  %v1307_v20 = vld [vmem:[%s1830_s0 + $0x20] sm:$0xff]  }
   0x7   :  { %1283 = vmatpush3.bf16.msra.mxu1 %v1290_v1  ;;  %1216 = vmatpush3.bf16.msra.mxu0 %v1290_v1  ;;  %v1306_v19 = vld [vmem:[%s1830_s0 + $0x18] sm:$0xff]   ;;  %v1308_v21 = vld [vmem:[%s1830_s0 + $0x28] sm:$0xff]   ;;  %v1309_v22 = vld [vmem:[%s1830_s0 + $0x30] sm:$0xff]  }
   0x8   :  { %1281 = vmatprep.subr.bf16.mxu1 %v1291_v4  ;;  %1217 = vmatprep.subr.bf16.mxu0 %v1291_v4  ;;  %v1310_v23 = vld [vmem:[%s1830_s0 + $0x38] sm:$0xff]   ;;  %v1311_v24 = vld [vmem:[%s1831_s7 + $0x10] ss:$0 sps:$4 sm:$0xff]   ;;  %v1312_v26 = vld [vmem:[%s1831_s7 + $0x8] sm:$0xff]  }
   0x9   :  { %v544_v25 = vsel %vm165_vm0, %v1311_v24, 0  ;;  %v1313_v27 = vld [vmem:[%s1831_s7] sm:$0xff]   ;;  %v1166_v34 = vld [vmem:[%s1832_s2 + $0x8] sm:$0xff]   ;;  %v1167_v36 = vld [vmem:[%s1832_s2 + $0x10] sm:$0xff]  }
   0xa   :  { %v1103_v28 = vld [vmem:[%s1832_s2] sm:$0xff]   ;;  %v1173_v35 = vld [vmem:[%s1833_s3 + $0x8] sm:$0xff]   ;;  %v1109_v38 = vunpack.c.h.bf16 %v1166_v34  ;;  %v1108_v40 = vunpack.c.l.bf16 %v1166_v34  ;;  %v1174_v42 = vld [vmem:[%s1833_s3 + $0x10] sm:$0xff]   ;;  %v1113_v46 = vunpack.c.h.bf16 %v1167_v36  ;;  %v1112_v51 = vunpack.c.l.bf16 %v1167_v36 }
   0xb   :  { %1284 = vmatpush3.bf16.msra.mxu1 %v1291_v4  ;;  %1218 = vmatpush3.bf16.msra.mxu0 %v1291_v4  ;;  %v1135_v29 = vld [vmem:[%s1833_s3] sm:$0xff]   ;;  %v1105_v30 = vunpack.c.h.bf16 %v1103_v28  ;;  %v1104_v32 = vunpack.c.l.bf16 %v1103_v28  ;;  %v1141_v39 = vunpack.c.h.bf16 %v1173_v35  ;;  %v1140_v41 = vunpack.c.l.bf16 %v1173_v35  ;;  %v1168_v43 = vld [vmem:[%s1832_s2 + $0x18] sm:$0xff]  }
   0xc   :  { %1287 = vmatprep.subr.msk.bf16.mxu1 %vm165_vm0, %v1294_v6  ;;  %1288 = vmatprep.subr.msk.bf16.mxu0 %vm165_vm0, %v1311_v24  ;;  %v1137_v31 = vunpack.c.h.bf16 %v1135_v29  ;;  %v1136_v33 = vunpack.c.l.bf16 %v1135_v29  ;;  %v1559_v37 = vld [vmem:[%s1834_s10] ss:$0 sm:$0xff]  ;;  %v1145_v47 = vunpack.c.h.bf16 %v1174_v42  ;;  %v1175_v48 = vld [vmem:[%s1833_s3 + $0x18] sm:$0xff]   ;;  %v1144_v52 = vunpack.c.l.bf16 %v1174_v42 }
   0xd   :  { %v726_v49 = vmul.f32 %v1141_v39, %v1109_v38  ;;  %v725_v50 = vmul.f32 %v1140_v41, %v1108_v40  ;;  %v1117_v56 = vunpack.c.h.bf16 %v1168_v43  ;;  %v1149_v60 = vunpack.c.h.bf16 %v1175_v48  ;;  %v1169_v61 = vld [vmem:[%s1832_s2 + $0x20] sm:$0xff]  }
   0xe   :  { %1228 = vmatmul.mubr.msk.bf16.vlgmr.msra.gmra.mxu1 %vm140_vm1, %v1293_v5  ;;  %1220 = vmatmul.mubr.msk.bf16.vlgmr.msra.gmra.mxu0 %vm140_vm1, %v1299_v8  ;;  %v724_v44 = vmul.f32 %v1137_v31, %v1105_v30  ;;  %v723_v45 = vmul.f32 %v1136_v33, %v1104_v32  ;;  %v728_v55 = vmul.f32 %v1145_v47, %v1113_v46  ;;  %v1176_v62 = vld [vmem:[%s1833_s3 + $0x20] sm:$0xff]   ;;  %v1116_v1 = vunpack.c.l.bf16 %v1168_v43 }
   0xf   :  { %1236 = vmatpush3.bf16.msra.mxu1 %v346_v10  ;;  %1231 = vmatprep.mubr.msk.bf16.mxu1 %vm140_vm1, %v1296_v9  ;;  %v821_v57 = vmul.f32 %v1559_v37, %v726_v49  ;;  %v820_v58 = vmul.f32 %v1559_v37, %v725_v50  ;;  %v727_v59 = vmul.f32 %v1144_v52, %v1112_v51  ;;  %v1148_v7 = vunpack.c.l.bf16 %v1175_v48  ;;  %v1621_v51 = vld [vmem:[%s1835_s6] ss:$0 sm:$0xff] }
  0x10   :  { %1237 = vmatprep.subr.bf16.mxu1 %v1295_v11  ;;  %1223 = vmatprep.mubr.msk.bf16.mxu0 %vm140_vm1, %v1303_v12  ;;  %v819_v53 = vmul.f32 %v1559_v37, %v724_v44  ;;  %v818_v54 = vmul.f32 %v1559_v37, %v723_v45  ;;  %v823_v3 = vmul.f32 %v1559_v37, %v728_v55  ;;  %v1121_v8 = vunpack.c.h.bf16 %v1169_v61  ;;  %v1589_v12 = vld [vmem:[%s1832_s2 + $0x28] sm:$0xff]  }
  0x11   :  { %1258 = vmatpush3.bf16.msra.mxu0 %v544_v25  ;;  %v843_v2 = vsel %vm762_vm2, %v821_v57, 0.0  ;;  %v822_v4 = vmul.f32 %v1559_v37, %v727_v59  ;;  %v730_v5 = vmul.f32 %v1149_v60, %v1117_v56  ;;  %v840_v6 = vsel %vm762_vm2, %v820_v58, 0.0 }
  0x12   :  { %1259 = vmatprep.subr.bf16.mxu0 %v1312_v26  ;;  %v837_v63 = vsel %vm762_vm2, %v819_v53, 0.0  ;;  %v834_v0 = vsel %vm762_vm2, %v818_v54, 0.0  ;;  %v1153_v9 = vunpack.c.h.bf16 %v1176_v62  ;;  %v1120_v10 = vunpack.c.l.bf16 %v1169_v61 }
  0x13   :  { %1238 = vmatpush3.bf16.msra.mxu1 %v1295_v11  ;;  %838 = vadd.xlane.f32.xlu1 %v837_v63  ;;  %v1152_v11 = vunpack.c.l.bf16 %v1176_v62 }
  0x14   :  { %1239 = vmatprep.subr.bf16.mxu1 %v1300_v13  ;;  %835 = vadd.xlane.f32.xlu0 %v834_v0 }
  0x15   :  { %1260 = vmatpush3.bf16.msra.mxu0 %v1312_v26 }
  0x16   :  { %1232 = vmatmul.mubr.msk.bf16.gmra.mxu1 %vm140_vm1, %v1297_v14  ;;  %1224 = vmatmul.mubr.msk.bf16.gmra.mxu0 %vm140_vm1, %v1304_v15  ;;  %v729_v14 = vmul.f32 %v1148_v7, %v1116_v1  ;;  %v849_v15 = vsel %vm762_vm2, %v823_v3, 0.0 }
  0x17   :  { %1240 = vmatpush3.bf16.msra.mxu1 %v1300_v13  ;;  %1241 = vmatprep.mubr.msk.bf16.mxu1 %vm140_vm1, %v1301_v16  ;;  %v1594_v13 = vld [vmem:[%s1833_s3 + $0x28] sm:$0xff]   ;;  %v846_v16 = vsel %vm762_vm2, %v822_v4, 0.0 }
  0x18   :  { %1261 = vmatprep.subr.bf16.mxu0 %v1313_v27  ;;  %844 = vadd.xlane.f32.xlu1 %v843_v2 }
  0x19   :  { %1262 = vmatpush3.bf16.msra.mxu0 %v1313_v27  ;;  %841 = vadd.xlane.f32.xlu0 %v840_v6 }
  0x1c   :  { %850 = vadd.xlane.f32.xlu1 %v849_v15 }
  0x1d   :  { %847 = vadd.xlane.f32.xlu0 %v846_v16 }
  0x1e   :  { %1242 = vmatmul.mubr.msk.bf16.vlgmr.msra.gmra.mxu1 %vm140_vm1, %v1302_v17  ;;  %v825_v17 = vmul.f32 %v1559_v37, %v730_v5 }
  0x1f   :  { %1245 = vmatprep.mubr.msk.bf16.mxu1 %vm140_vm1, %v1305_v18  ;;  %v732_v18 = vmul.f32 %v1153_v9, %v1121_v8 }
  0x21   :  { %v827_v25 = vmul.f32 %v1559_v37, %v732_v18 }
  0x23   :  { %v861_v28 = vsel %vm762_vm2, %v827_v25, 0.0 }
  0x26   :  { %1246 = vmatmul.mubr.msk.bf16.gmra.mxu1 %vm140_vm1, %v1306_v19  ;;  %v824_v19 = vmul.f32 %v1559_v37, %v729_v14 }
  0x27   :  { %1249 = vmatprep.mubr.msk.bf16.mxu1 %vm140_vm1, %v1307_v20  ;;  %v731_v20 = vmul.f32 %v1152_v11, %v1120_v10 }
  0x28   :  { %v852_v24 = vsel %vm762_vm2, %v824_v19, 0.0 }
  0x29   :  { %v826_v26 = vmul.f32 %v1559_v37, %v731_v20  ;;  %853 = vadd.xlane.f32.xlu0 %v852_v24 }
  0x2b   :  { %v858_v29 = vsel %vm762_vm2, %v826_v26, 0.0 }
  0x2d   :  { %859 = vadd.xlane.f32.xlu0 %v858_v29 }
  0x2e   :  { %1250 = vmatmul.mubr.msk.bf16.gmra.mxu1 %vm140_vm1, %v1308_v21  ;;  %v1125_v21 = vunpack.c.h.bf16 %v1589_v12 }
  0x2f   :  { %1253 = vmatprep.mubr.msk.bf16.mxu1 %vm140_vm1, %v1309_v22  ;;  %v1157_v22 = vunpack.c.h.bf16 %v1594_v13 }
  0x31   :  { %v734_v27 = vmul.f32 %v1157_v22, %v1125_v21 }
  0x33   :  { %v829_v30 = vmul.f32 %v1559_v37, %v734_v27 }
  0x35   :  { %v867_v31 = vsel %vm762_vm2, %v829_v30, 0.0 }
  0x36   :  { %1254 = vmatmul.mubr.msk.bf16.gmra.mxu1 %vm140_vm1, %v1310_v23  ;;  %v855_v23 = vsel %vm762_vm2, %v825_v17, 0.0 }
  0x37   :  { %856 = vadd.xlane.f32.xlu1 %v855_v23 }
  0x3b   :  { %862 = vadd.xlane.f32.xlu1 %v861_v28 }
  0x3f   :  { %868 = vadd.xlane.f32.xlu1 %v867_v31 }
  0xce   :  { %v1229_v32 = vpop.f32.mrf.mxu1  ;;  %v1221_v34 = vpop.f32.mrf.mxu0 }
  0xd0   :  { %v235_v33 = vpop.f32.mrf.mxu1  ;;  %v203_v38 = vpop.f32.mrf.mxu0 }
  0xd2   :  { %v1230_v35 = vpop.f32.mrf.mxu1  ;;  %v1222_v41 = vpop.f32.mrf.mxu0 }
  0xd4   :  { %v238_v36 = vpop.f32.mrf.mxu1  ;;  %v206_v44 = vpop.f32.mrf.mxu0 }
  0xd6   :  { %v1610_v39 = vpop.f32.mrf.mxu1  ;;  %v1225_v47 = vpop.f32.mrf.mxu0 }
  0xd8   :  { %v1612_v40 = vpop.f32.mrf.mxu1  ;;  %v219_v53 = vpop.f32.mrf.mxu0 }
  0xda   :  { %v1614_v42 = vpop.f32.mrf.mxu1  ;;  %v1226_v62 = vpop.f32.mrf.mxu0 }
  0xdc   :  { %v1616_v43 = vpop.f32.mrf.mxu1  ;;  %v222_v9 = vpop.f32.mrf.mxu0 }
  0xde   :  { %v1243_v45 = vpop.f32.mrf.mxu1 }
  0xdf   :  { %v391_v49 = vadd.f32 %v1243_v45, %v1221_v34 }
  0xe0   :  { %v382_v46 = vpop.f32.mrf.mxu1 }
  0xe1   :  { %v383_v48 = vadd.f32 %v382_v46, %v203_v38  ;;  %v454_v58 = vadd.f32 %v1621_v51, %v391_v49 }
  0xe2   :  { %v1244_v50 = vpop.f32.mrf.mxu1 }
  0xe3   :  { %v394_v52 = vadd.f32 %v1244_v50, %v1222_v41  ;;  %v452_v55 = vadd.f32 %v1621_v51, %v383_v48  ;;  %v470_v3 = vmax.f32 %v454_v58, 0.0 }
  0xe4   :  { %v385_v54 = vpop.f32.mrf.mxu1 }
  0xe5   :  { %v455_v56 = vadd.f32 %v1621_v51, %v394_v52  ;;  %v386_v57 = vadd.f32 %v385_v54, %v206_v44  ;;  %v468_v0 = vmax.f32 %v452_v55, 0.0 }
  0xe6   :  { %v1247_v59 = vpop.f32.mrf.mxu1 }
  0xe7   :  { %v453_v60 = vadd.f32 %v1621_v51, %v386_v57  ;;  %v471_v61 = vmax.f32 %v455_v56, 0.0  ;;  %v407_v4 = vadd.f32 %v1247_v59, %v1225_v47 }
  0xe8   :  { %v398_v63 = vpop.f32.mrf.mxu1 }
  0xe9   :  { %v469_v1 = vmax.f32 %v453_v60, 0.0  ;;  %v399_v2 = vadd.f32 %v398_v63, %v219_v53  ;;  %v485_v8 = vpack.c.bf16 %v471_v61, %v470_v3  ;;  %v458_v16 = vadd.f32 %v1621_v51, %v407_v4 }
  0xea   :  { %v1248_v5 = vpop.f32.mrf.mxu1  ;;  %v1156_v63 = vunpack.c.l.bf16 %v1594_v13 }
  0xeb   :  { %v484_v6 = vpack.c.bf16 %v469_v1, %v468_v0  ;;  %v410_v7 = vadd.f32 %v1248_v5, %v1226_v62  ;;  %v456_v11 = vadd.f32 %v1621_v51, %v399_v2  ;;  %v474_v24 = vmax.f32 %v458_v16, 0.0  ;;  %v1171_v0 = vld [vmem:[%s1832_s2 + $0x30] sm:$0xff]  }
  0xec   :  { %v401_v10 = vpop.f32.mrf.mxu1  ;;  %v1129_v2 = vunpack.c.h.bf16 %v1171_v0 }
  0xed   :  { %v459_v14 = vadd.f32 %v1621_v51, %v410_v7  ;;  %v402_v15 = vadd.f32 %v401_v10, %v222_v9  ;;  %1263 = vmatprep.mubr.msk.bf16.mxu0 %vm140_vm1, %v484_v6  ;;  %v472_v21 = vmax.f32 %v456_v11, 0.0  ;;  %v1128_v6 = vunpack.c.l.bf16 %v1171_v0 }
  0xee   :  { %v1251_v17 = vpop.f32.mrf.mxu1  ;;  %1264 = vmatmul.mubr.msk.bf16.vlgmr.msra.gmra.mxu0 %vm140_vm1, %v485_v8 }
  0xef   :  { %v457_v18 = vadd.f32 %v1621_v51, %v402_v15  ;;  %v475_v19 = vmax.f32 %v459_v14, 0.0  ;;  %v423_v25 = vadd.f32 %v1251_v17, %v1229_v32  ;;  %v1668_v14 = vld [vmem:[%s1836_s8] ss:$0 sm:$0xff] }
  0xf0   :  { %v414_v20 = vpop.f32.mrf.mxu1 }
  0xf1   :  { %v473_v22 = vmax.f32 %v457_v18, 0.0  ;;  %v415_v23 = vadd.f32 %v414_v20, %v235_v33  ;;  %v487_v29 = vpack.c.bf16 %v475_v19, %v474_v24  ;;  %v462_v41 = vadd.f32 %v1621_v51, %v423_v25  ;;  %v1674_v18 = vld [vmem:[%s1837_s9] ss:$0 sm:$0xff] }
  0xf2   :  { %v1252_v26 = vpop.f32.mrf.mxu1 }
  0xf3   :  { %v486_v27 = vpack.c.bf16 %v473_v22, %v472_v21  ;;  %v426_v28 = vadd.f32 %v1252_v26, %v1230_v35  ;;  %v460_v31 = vadd.f32 %v1621_v51, %v415_v23  ;;  %v478_v48 = vmax.f32 %v462_v41, 0.0 }
  0xf4   :  { %v417_v30 = vpop.f32.mrf.mxu1 }
  0xf5   :  { %v463_v34 = vadd.f32 %v1621_v51, %v426_v28  ;;  %v418_v38 = vadd.f32 %v417_v30, %v238_v36  ;;  %1267 = vmatprep.mubr.msk.bf16.mxu0 %vm140_vm1, %v486_v27  ;;  %v476_v46 = vmax.f32 %v460_v31, 0.0 }
  0xf6   :  { %v1255_v44 = vpop.f32.mrf.mxu1  ;;  %1268 = vmatmul.mubr.msk.bf16.gmra.mxu0 %vm140_vm1, %v487_v29 }
  0xf7   :  { %v461_v33 = vadd.f32 %v1621_v51, %v418_v38  ;;  %v479_v32 = vmax.f32 %v463_v34, 0.0  ;;  %v439_v49 = vadd.f32 %v1255_v44, %v1610_v39 }
  0xf8   :  { %v430_v45 = vpop.f32.mrf.mxu1 }
  0xf9   :  { %v477_v35 = vmax.f32 %v461_v33, 0.0  ;;  %v431_v47 = vadd.f32 %v430_v45, %v1612_v40  ;;  %v489_v53 = vpack.c.bf16 %v479_v32, %v478_v48  ;;  %v466_v58 = vadd.f32 %v1621_v51, %v439_v49 }
  0xfa   :  { %v1256_v50 = vpop.f32.mrf.mxu1 }
  0xfb   :  { %v488_v36 = vpack.c.bf16 %v477_v35, %v476_v46  ;;  %v442_v52 = vadd.f32 %v1256_v50, %v1614_v42  ;;  %v464_v55 = vadd.f32 %v1621_v51, %v431_v47  ;;  %v482_v42 = vmax.f32 %v466_v58, 0.0 }
  0xfc   :  { %v433_v54 = vpop.f32.mrf.mxu1 }
  0xfd   :  { %v467_v56 = vadd.f32 %v1621_v51, %v442_v52  ;;  %v434_v57 = vadd.f32 %v433_v54, %v1616_v43  ;;  %1271 = vmatprep.mubr.msk.bf16.mxu0 %vm140_vm1, %v488_v36  ;;  %v480_v59 = vmax.f32 %v464_v55, 0.0  ;;  %v1124_v43 = vunpack.c.l.bf16 %v1589_v12 }
  0xfe   :  { %1272 = vmatmul.mubr.msk.bf16.gmra.mxu0 %vm140_vm1, %v489_v53 }
  0xff   :  { %v465_v39 = vadd.f32 %v1621_v51, %v434_v57  ;;  %v483_v40 = vmax.f32 %v467_v56, 0.0  ;;  %v1178_v51 = vld [vmem:[%s1833_s3 + $0x30] sm:$0xff]   ;;  %v733_v1 = vmul.f32 %v1156_v63, %v1124_v43 }
 0x100   :  { %v1161_v3 = vunpack.c.h.bf16 %v1178_v51  ;;  %v1160_v7 = vunpack.c.l.bf16 %v1178_v51 }
 0x101   :  { %v481_v60 = vmax.f32 %v465_v39, 0.0  ;;  %v491_v62 = vpack.c.bf16 %v483_v40, %v482_v42  ;;  %v828_v4 = vmul.f32 %v1559_v37, %v733_v1 }
 0x102   :  { %v736_v5 = vmul.f32 %v1161_v3, %v1129_v2  ;;  %v735_v8 = vmul.f32 %v1160_v7, %v1128_v6  ;;  %v1179_v6 = vld [vmem:[%s1833_s3 + $0x38] sm:$0xff]  }
 0x103   :  { %v490_v61 = vpack.c.bf16 %v481_v60, %v480_v59  ;;  %v864_v12 = vsel %vm762_vm2, %v828_v4, 0.0 }
 0x104   :  { %v831_v13 = vmul.f32 %v1559_v37, %v736_v5  ;;  %865 = vadd.xlane.f32.xlu0 %v864_v12  ;;  %v830_v10 = vmul.f32 %v1559_v37, %v735_v8  ;;  %v1172_v5 = vld [vmem:[%s1832_s2 + $0x38] sm:$0xff]  }
 0x105   :  { %1275 = vmatprep.mubr.msk.bf16.mxu0 %vm140_vm1, %v490_v61 }
 0x106   :  { %1276 = vmatmul.mubr.msk.bf16.gmra.mxu0 %vm140_vm1, %v491_v62  ;;  %v873_v9 = vsel %vm762_vm2, %v831_v13, 0.0  ;;  %v870_v11 = vsel %vm762_vm2, %v830_v10, 0.0 }
 0x107   :  { %874 = vadd.xlane.f32.xlu1 %v873_v9 }
 0x108   :  { %871 = vadd.xlane.f32.xlu0 %v870_v11 }
 0x1ae   :  { %v1265_v15 = vpop.f32.mrf.mxu0 }
 0x1af   :  { %v589_v16 = vadd.f32 %v1265_v15, %v1668_v14  ;;  %v1132_v15 = vunpack.c.l.bf16 %v1172_v5 }
 0x1b0   :  { %v580_v17 = vpop.f32.mrf.mxu0 }
 0x1b1   :  { %v645_v19 = vmax.f32 %v589_v16, 0.0  ;;  %v581_v20 = vadd.f32 %v1668_v14, %v580_v17  ;;  %v1164_v16 = vunpack.c.l.bf16 %v1179_v6 }
 0x1b2   :  { %v1266_v21 = vpop.f32.mrf.mxu0 }
 0x1b3   :  { %v643_v22 = vmax.f32 %v581_v20, 0.0  ;;  %v592_v23 = vadd.f32 %v1266_v21, %v1668_v14  ;;  %v748_v24 = vmul.f32 %v1674_v18, %v645_v19 }
 0x1b4   :  { %v583_v25 = vpop.f32.mrf.mxu0 }
 0x1b5   :  { %v646_v26 = vmax.f32 %v592_v23, 0.0  ;;  %v584_v27 = vadd.f32 %v1668_v14, %v583_v25  ;;  %v769_v28 = vsel %vm762_vm2, %v748_v24, 0.0  ;;  %v746_v29 = vmul.f32 %v1674_v18, %v643_v22 }
 0x1b6   :  { %770 = vadd.xlane.f32.xlu1 %v769_v28  ;;  %v1269_v30 = vpop.f32.mrf.mxu0  ;;  %v1133_v23 = vunpack.c.h.bf16 %v1172_v5  ;;  %v1165_v24 = vunpack.c.h.bf16 %v1179_v6 }
 0x1b7   :  { %v644_v31 = vmax.f32 %v584_v27, 0.0  ;;  %v605_v34 = vadd.f32 %v1269_v30, %v1668_v14  ;;  %v763_v38 = vsel %vm762_vm2, %v746_v29, 0.0  ;;  %v749_v41 = vmul.f32 %v1674_v18, %v646_v26 }
 0x1b8   :  { %v596_v44 = vpop.f32.mrf.mxu0  ;;  %764 = vadd.xlane.f32.xlu0 %v763_v38  ;;  %v737_v38 = vmul.f32 %v1164_v16, %v1132_v15 }
 0x1b9   :  { %v649_v33 = vmax.f32 %v605_v34, 0.0  ;;  %v597_v32 = vadd.f32 %v1668_v14, %v596_v44  ;;  %v772_v45 = vsel %vm762_vm2, %v749_v41, 0.0  ;;  %v747_v46 = vmul.f32 %v1674_v18, %v644_v31 }
 0x1ba   :  { %773 = vadd.xlane.f32.xlu1 %v772_v45  ;;  %v1270_v35 = vpop.f32.mrf.mxu0  ;;  %v738_v41 = vmul.f32 %v1165_v24, %v1133_v23 }
 0x1bb   :  { %v647_v47 = vmax.f32 %v597_v32, 0.0  ;;  %v608_v48 = vadd.f32 %v1270_v35, %v1668_v14  ;;  %v766_v49 = vsel %vm762_vm2, %v747_v46, 0.0  ;;  %v752_v50 = vmul.f32 %v1674_v18, %v649_v33 }
 0x1bc   :  { %v599_v36 = vpop.f32.mrf.mxu0  ;;  %767 = vadd.xlane.f32.xlu0 %v766_v49 }
 0x1bd   :  { %v650_v52 = vmax.f32 %v608_v48, 0.0  ;;  %v600_v53 = vadd.f32 %v1668_v14, %v599_v36  ;;  %v781_v55 = vsel %vm762_vm2, %v752_v50, 0.0  ;;  %v750_v39 = vmul.f32 %v1674_v18, %v647_v47 }
 0x1be   :  { %v1273_v54 = vpop.f32.mrf.mxu0  ;;  %v832_v47 = vmul.f32 %v1559_v37, %v737_v38  ;;  %v833_v48 = vmul.f32 %v1559_v37, %v738_v41 }
 0x1bf   :  { %v648_v56 = vmax.f32 %v600_v53, 0.0  ;;  %v621_v57 = vadd.f32 %v1273_v54, %v1668_v14  ;;  %v753_v58 = vmul.f32 %v1674_v18, %v650_v52  ;;  %v775_v0 = vsel %vm762_vm2, %v750_v39, 0.0  ;;  %v839_v52 = vpop.xlane.xlu1 %838  ;;  %v836_v53 = vpop.xlane.xlu0 %835 }
 0x1c0   :  { %v612_v40 = vpop.f32.mrf.mxu0  ;;  %782 = vadd.xlane.f32.xlu0 %v781_v55  ;;  %v876_v50 = vsel %vm762_vm2, %v832_v47, 0.0  ;;  %v879_v36 = vsel %vm762_vm2, %v833_v48, 0.0 }
 0x1c1   :  { %v653_v59 = vmax.f32 %v621_v57, 0.0  ;;  %v613_v60 = vadd.f32 %v1668_v14, %v612_v40  ;;  %v784_v42 = vsel %vm762_vm2, %v753_v58, 0.0  ;;  %v751_v61 = vmul.f32 %v1674_v18, %v648_v56 }
 0x1c2   :  { %785 = vadd.xlane.f32.xlu1 %v784_v42  ;;  %v1274_v62 = vpop.f32.mrf.mxu0 }
 0x1c3   :  { %v651_v43 = vmax.f32 %v613_v60, 0.0  ;;  %v624_v63 = vadd.f32 %v1274_v62, %v1668_v14  ;;  %v756_v51 = vmul.f32 %v1674_v18, %v653_v59  ;;  %v778_v4 = vsel %vm762_vm2, %v751_v61, 0.0  ;;  %v842_v54 = vpop.xlane.xlu0 %841 }
 0x1c4   :  { %v615_v1 = vpop.f32.mrf.mxu0  ;;  %776 = vadd.xlane.f32.xlu0 %v775_v0  ;;  %v1742_v61 = vstv %s1838_s11 }
 0x1c5   :  { %v654_v2 = vmax.f32 %v624_v63, 0.0  ;;  %v616_v3 = vadd.f32 %v1668_v14, %v615_v1  ;;  %v793_v12 = vsel %vm762_vm2, %v756_v51, 0.0  ;;  %v754_v10 = vmul.f32 %v1674_v18, %v651_v43 }
 0x1c6   :  { %v1277_v7 = vpop.f32.mrf.mxu0  ;;  %779 = vadd.xlane.f32.xlu1 %v778_v4 }
 0x1c7   :  { %v652_v13 = vmax.f32 %v616_v3, 0.0  ;;  %v637_v8 = vadd.f32 %v1277_v7, %v1668_v14  ;;  %v757_v9 = vmul.f32 %v1674_v18, %v654_v2  ;;  %v787_v27 = vsel %vm762_vm2, %v754_v10, 0.0  ;;  %v848_v56 = vpop.xlane.xlu0 %847 }
 0x1c8   :  { %v628_v11 = vpop.f32.mrf.mxu0  ;;  %794 = vadd.xlane.f32.xlu0 %v793_v12 }
 0x1c9   :  { %v657_v17 = vmax.f32 %v637_v8, 0.0  ;;  %v629_v19 = vadd.f32 %v1668_v14, %v628_v11  ;;  %v796_v20 = vsel %vm762_vm2, %v757_v9, 0.0  ;;  %v755_v21 = vmul.f32 %v1674_v18, %v652_v13 }
 0x1ca   :  { %v1278_v22 = vpop.f32.mrf.mxu0  ;;  %797 = vadd.xlane.f32.xlu1 %v796_v20 }
 0x1cb   :  { %v655_v25 = vmax.f32 %v629_v19, 0.0  ;;  %v640_v26 = vadd.f32 %v1278_v22, %v1668_v14  ;;  %v760_v28 = vmul.f32 %v1674_v18, %v657_v17  ;;  %v790_v34 = vsel %vm762_vm2, %v755_v21, 0.0  ;;  %v854_v58 = vpop.xlane.xlu0 %853 }
 0x1cc   :  { %v631_v29 = vpop.f32.mrf.mxu0  ;;  %788 = vadd.xlane.f32.xlu0 %v787_v27 }
 0x1cd   :  { %v658_v30 = vmax.f32 %v640_v26, 0.0  ;;  %v632_v31 = vadd.f32 %v1668_v14, %v631_v29  ;;  %v805_v33 = vsel %vm762_vm2, %v760_v28, 0.0  ;;  %v758_v45 = vmul.f32 %v1674_v18, %v655_v25 }
 0x1ce   :  { %791 = vadd.xlane.f32.xlu1 %v790_v34 }
 0x1cf   :  { %v656_v44 = vmax.f32 %v632_v31, 0.0  ;;  %v761_v32 = vmul.f32 %v1674_v18, %v658_v30  ;;  %v799_v14 = vsel %vm762_vm2, %v758_v45, 0.0  ;;  %v860_v37 = vpop.xlane.xlu0 %859 }
 0x1d0   :  { %806 = vadd.xlane.f32.xlu0 %v805_v33 }
 0x1d1   :  { %v808_v46 = vsel %vm762_vm2, %v761_v32, 0.0  ;;  %v759_v35 = vmul.f32 %v1674_v18, %v656_v44  ;;  %v845_v18 = vpop.xlane.xlu1 %844 }
 0x1d2   :  { %809 = vadd.xlane.f32.xlu1 %v808_v46 }
 0x1d3   :  { %v802_v49 = vsel %vm762_vm2, %v759_v35, 0.0  ;;  %v866_v59 = vpop.xlane.xlu0 %865 }
 0x1d4   :  { %800 = vadd.xlane.f32.xlu0 %v799_v14 }
 0x1d5   :  { %v851_v55 = vpop.xlane.xlu1 %850 }
 0x1d6   :  { %803 = vadd.xlane.f32.xlu1 %v802_v49 }
 0x1d7   :  { %v1737_v42 = vpop.xlane.xlu0 %871 }
 0x1d8   :  { %877 = vadd.xlane.f32.xlu0 %v876_v50 }
 0x1d9   :  { %v857_v57 = vpop.xlane.xlu1 %856 }
 0x1da   :  { %880 = vadd.xlane.f32.xlu1 %v879_v36 }
 0x1dd   :  { %v1733_v39 = vpop.xlane.xlu1 %862 }
 0x1e1   :  { %v869_v40 = vpop.xlane.xlu1 %868 }
 0x1e5   :  { %v1735_v60 = vpop.xlane.xlu1 %874 }
 0x23f   :  { %v771_v62 = vpop.xlane.xlu1 %770 }
 0x240   :  { %v884_v43 = vadd.f32 %v842_v54, %v771_v62 }
 0x241   :  { %v765_v63 = vpop.xlane.xlu0 %764 }
 0x242   :  { %v902_v0 = vadd.f32 %v1742_v61, %v884_v43  ;;  %v882_v51 = vadd.f32 %v836_v53, %v765_v63 }
 0x243   :  { %v774_v1 = vpop.xlane.xlu1 %773 }
 0x244   :  { %v1088_v2 = vmul.f32 -1.442695, %v902_v0  ;;  %v900_v3 = vadd.f32 %v1742_v61, %v882_v51  ;;  %v885_v4 = vadd.f32 %v845_v18, %v774_v1 }
 0x245   :  { %v768_v5 = vpop.xlane.xlu0 %767 }
 0x246   :  { %1314 = vpow2.f32 %v1088_v2  ;;  %v1086_v6 = vmul.f32 -1.442695, %v900_v3  ;;  %v903_v7 = vadd.f32 %v1742_v61, %v885_v4  ;;  %v883_v12 = vadd.f32 %v839_v52, %v768_v5 }
 0x248   :  { %1316 = vpow2.f32 %v1086_v6  ;;  %v1089_v13 = vmul.f32 -1.442695, %v903_v7  ;;  %v901_v8 = vadd.f32 %v1742_v61, %v883_v12 }
 0x249   :  { %v783_v9 = vpop.xlane.xlu0 %782 }
 0x24a   :  { %1318 = vpow2.f32 %v1089_v13  ;;  %v1087_v10 = vmul.f32 -1.442695, %v901_v8  ;;  %v888_v11 = vadd.f32 %v854_v58, %v783_v9 }
 0x24b   :  { %v786_v15 = vpop.xlane.xlu1 %785 }
 0x24c   :  { %1320 = vpow2.f32 %v1087_v10  ;;  %v906_v16 = vadd.f32 %v1742_v61, %v888_v11  ;;  %v889_v17 = vadd.f32 %v857_v57, %v786_v15 }
 0x24d   :  { %v777_v19 = vpop.xlane.xlu0 %776 }
 0x24e   :  { %v1092_v20 = vmul.f32 -1.442695, %v906_v16  ;;  %v907_v21 = vadd.f32 %v1742_v61, %v889_v17  ;;  %v886_v22 = vadd.f32 %v848_v56, %v777_v19 }
 0x24f   :  { %v780_v23 = vpop.xlane.xlu1 %779 }
 0x250   :  { %1322 = vpow2.f32 %v1092_v20  ;;  %v1093_v24 = vmul.f32 -1.442695, %v907_v21  ;;  %v904_v25 = vadd.f32 %v1742_v61, %v886_v22  ;;  %v887_v26 = vadd.f32 %v851_v55, %v780_v23 }
 0x251   :  { %v795_v27 = vpop.xlane.xlu0 %794 }
 0x252   :  { %1324 = vpow2.f32 %v1093_v24  ;;  %v1090_v28 = vmul.f32 -1.442695, %v904_v25  ;;  %v905_v29 = vadd.f32 %v1742_v61, %v887_v26  ;;  %v892_v30 = vadd.f32 %v866_v59, %v795_v27 }
 0x253   :  { %v1315_v31 = vpop.eup %1314  ;;  %v798_v34 = vpop.xlane.xlu1 %797 }
 0x254   :  { %v966_v38 = vadd.f32 1.0, %v1315_v31  ;;  %1326 = vpow2.f32 %v1090_v28  ;;  %v1091_v41 = vmul.f32 -1.442695, %v905_v29  ;;  %v910_v44 = vadd.f32 %v1742_v61, %v892_v30 }
 0x255   :  { %v1317_v33 = vpop.eup %1316  ;;  %v893_v32 = vadd.f32 %v869_v40, %v798_v34  ;;  %v789_v45 = vpop.xlane.xlu0 %788 }
 0x256   :  { %1328 = vrcp.f32 %v966_v38  ;;  %v964_v46 = vadd.f32 1.0, %v1317_v33  ;;  %v1096_v35 = vmul.f32 -1.442695, %v910_v44  ;;  %v890_v47 = vadd.f32 %v860_v37, %v789_v45 }
 0x257   :  { %v1319_v14 = vpop.eup %1318  ;;  %1330 = vpow2.f32 %v1091_v41  ;;  %v911_v48 = vadd.f32 %v1742_v61, %v893_v32  ;;  %v792_v49 = vpop.xlane.xlu1 %791 }
 0x258   :  { %1332 = vrcp.f32 %v964_v46  ;;  %v967_v50 = vadd.f32 1.0, %v1319_v14  ;;  %v908_v36 = vadd.f32 %v1742_v61, %v890_v47  ;;  %v891_v52 = vadd.f32 %v1733_v39, %v792_v49 }
 0x259   :  { %v1321_v53 = vpop.eup %1320  ;;  %1334 = vpow2.f32 %v1096_v35  ;;  %v1097_v18 = vmul.f32 -1.442695, %v911_v48  ;;  %v807_v54 = vpop.xlane.xlu0 %806 }
 0x25a   :  { %1336 = vrcp.f32 %v967_v50  ;;  %v965_v55 = vadd.f32 1.0, %v1321_v53  ;;  %v1094_v56 = vmul.f32 -1.442695, %v908_v36  ;;  %v909_v57 = vadd.f32 %v1742_v61, %v891_v52 }
 0x25b   :  { %1338 = vpow2.f32 %v1097_v18  ;;  %v810_v58 = vpop.xlane.xlu1 %809 }
 0x25c   :  { %1340 = vrcp.f32 %v965_v55  ;;  %v1095_v37 = vmul.f32 -1.442695, %v909_v57 }
 0x25d   :  { %v1323_v40 = vpop.eup %1322  ;;  %1342 = vpow2.f32 %v1094_v56  ;;  %v801_v59 = vpop.xlane.xlu0 %800 }
 0x25e   :  { %v970_v62 = vadd.f32 1.0, %v1323_v40  ;;  %1344 = vpow2.f32 %v1095_v37  ;;  %v894_v39 = vadd.f32 %v1737_v42, %v801_v59 }
 0x25f   :  { %v1325_v43 = vpop.eup %1324  ;;  %v804_v63 = vpop.xlane.xlu1 %803 }
 0x260   :  { %1346 = vrcp.f32 %v970_v62  ;;  %v971_v0 = vadd.f32 1.0, %v1325_v43  ;;  %v912_v51 = vadd.f32 %v1742_v61, %v894_v39  ;;  %v895_v1 = vadd.f32 %v1735_v60, %v804_v63 }
 0x261   :  { %v1327_v2 = vpop.eup %1326  ;;  %v878_v3 = vpop.xlane.xlu0 %877 }
 0x262   :  { %1348 = vrcp.f32 %v971_v0  ;;  %v968_v4 = vadd.f32 1.0, %v1327_v2  ;;  %v1098_v5 = vmul.f32 -1.442695, %v912_v51  ;;  %v913_v6 = vadd.f32 %v1742_v61, %v895_v1 }
 0x263   :  { %v1329_v7 = vpop.eup %1328  ;;  %v896_v12 = vadd.f32 %v878_v3, %v807_v54  ;;  %v881_v13 = vpop.xlane.xlu1 %880 }
 0x264   :  { %v1331_v42 = vpop.eup %1330  ;;  %1015 = vst.msk [vmem:[%s1839_s12 + $0x10] sm:$0xff] %vm1012_vm3, %v1329_v7  ;;  %1350 = vrcp.f32 %v968_v4  ;;  %v1099_v8 = vmul.f32 -1.442695, %v913_v6  ;;  %v897_v60 = vadd.f32 %v881_v13, %v810_v58 }
 0x265   :  { %v1333_v9 = vpop.eup %1332  ;;  %v969_v10 = vadd.f32 1.0, %v1331_v42  ;;  %1352 = vpow2.f32 %v1098_v5  ;;  %v914_v11 = vadd.f32 %v1742_v61, %v896_v12 }
 0x266   :  { %v1335_v15 = vpop.eup %1334  ;;  %1013 = vst.msk [vmem:[%s1839_s12] sm:$0xff] %vm1012_vm3, %v1333_v9  ;;  %1354 = vpow2.f32 %v1099_v8  ;;  %v915_v16 = vadd.f32 %v1742_v61, %v897_v60 }
 0x267   :  { %v1337_v17 = vpop.eup %1336  ;;  %1356 = vrcp.f32 %v969_v10  ;;  %v974_v19 = vadd.f32 1.0, %v1335_v15  ;;  %v1100_v20 = vmul.f32 -1.442695, %v914_v11 }
 0x268   :  { %v1339_v21 = vpop.eup %1338  ;;  %1016 = vst.msk [vmem:[%s1839_s12 + $0x18] sm:$0xff] %vm1012_vm3, %v1337_v17  ;;  %v1101_v22 = vmul.f32 -1.442695, %v915_v16 }
 0x269   :  { %v1341_v23 = vpop.eup %1340  ;;  %1358 = vrcp.f32 %v974_v19  ;;  %v975_v24 = vadd.f32 1.0, %v1339_v21 }
 0x26a   :  { %v1343_v25 = vpop.eup %1342  ;;  %1014 = vst.msk [vmem:[%s1839_s12 + $0x8] sm:$0xff] %vm1012_vm3, %v1341_v23  ;;  %1360 = vpow2.f32 %v1100_v20 }
 0x26b   :  { %v1345_v61 = vpop.eup %1344  ;;  %1362 = vrcp.f32 %v975_v24  ;;  %v972_v26 = vadd.f32 1.0, %v1343_v25 }
 0x26c   :  { %v973_v27 = vadd.f32 1.0, %v1345_v61  ;;  %1364 = vpow2.f32 %v1101_v22 }
 0x26d   :  { %v1347_v28 = vpop.eup %1346  ;;  %1366 = vrcp.f32 %v972_v26 }
 0x26e   :  { %1019 = vst.msk [vmem:[%s1839_s12 + $0x30] sm:$0xff] %vm1012_vm3, %v1347_v28  ;;  %1368 = vrcp.f32 %v973_v27 }
 0x26f   :  { %v1349_v29 = vpop.eup %1348 }
 0x270   :  { %1020 = vst.msk [vmem:[%s1839_s12 + $0x38] sm:$0xff] %vm1012_vm3, %v1349_v29 }
 0x271   :  { %v1351_v30 = vpop.eup %1350 }
 0x272   :  { %v1353_v31 = vpop.eup %1352  ;;  %1017 = vst.msk [vmem:[%s1839_s12 + $0x20] sm:$0xff] %vm1012_vm3, %v1351_v30 }
 0x273   :  { %v1355_v34 = vpop.eup %1354  ;;  %v976_v38 = vadd.f32 1.0, %v1353_v31 }
 0x274   :  { %v1357_v41 = vpop.eup %1356  ;;  %v977_v44 = vadd.f32 1.0, %v1355_v34 }
 0x275   :  { %1018 = vst.msk [vmem:[%s1839_s12 + $0x28] sm:$0xff] %vm1012_vm3, %v1357_v41  ;;  %1370 = vrcp.f32 %v976_v38 }
 0x276   :  { %v1359_v33 = vpop.eup %1358  ;;  %1372 = vrcp.f32 %v977_v44 }
 0x277   :  { %v1361_v32 = vpop.eup %1360  ;;  %1023 = vst.msk [vmem:[%s1839_s12 + $0x50] sm:$0xff] %vm1012_vm3, %v1359_v33 }
 0x278   :  { %v1363_v45 = vpop.eup %1362  ;;  %v978_v46 = vadd.f32 1.0, %v1361_v32 }
 0x279   :  { %v1365_v35 = vpop.eup %1364  ;;  %1024 = vst.msk [vmem:[%s1839_s12 + $0x58] sm:$0xff] %vm1012_vm3, %v1363_v45 }
 0x27a   :  { %v1367_v47 = vpop.eup %1366  ;;  %1374 = vrcp.f32 %v978_v46  ;;  %v979_v14 = vadd.f32 1.0, %v1365_v35 }
 0x27b   :  { %v1369_v48 = vpop.eup %1368  ;;  %1021 = vst.msk [vmem:[%s1839_s12 + $0x40] sm:$0xff] %vm1012_vm3, %v1367_v47 }
 0x27c   :  { %1022 = vst.msk [vmem:[%s1839_s12 + $0x48] sm:$0xff] %vm1012_vm3, %v1369_v48  ;;  %1376 = vrcp.f32 %v979_v14 }
 0x282   :  { %v1371_v49 = vpop.eup %1370 }
 0x283   :  { %v1373_v50 = vpop.eup %1372  ;;  %1025 = vst.msk [vmem:[%s1839_s12 + $0x60] sm:$0xff] %vm1012_vm3, %v1371_v49 }
 0x284   :  { %1026 = vst.msk [vmem:[%s1839_s12 + $0x68] sm:$0xff] %vm1012_vm3, %v1373_v50 }
 0x287   :  { %v1375_v36 = vpop.eup %1374 }
 0x288   :  { %1027 = vst.msk [vmem:[%s1839_s12 + $0x70] sm:$0xff] %vm1012_vm3, %v1375_v36 }
 0x289   :  { %v1377_v52 = vpop.eup %1376 }
 0x28a   :  { %1028 = vst.msk [vmem:[%s1839_s12 + $0x78] sm:$0xff] %vm1012_vm3, %v1377_v52 }

</bundles_post_ra>
